<compile_context>
chip_gen: v5e
topology: v5e:2x2
jax: 0.10.0
libtpu: 0.0.40
codegen_flags: <defaults>
</compile_context>

<pallas_src>
import jax
import jax.numpy as jnp
from jax import lax
from jax.experimental import pallas as pl
from jax.experimental.pallas import tpu as pltpu


def mlp_kernel(x_ref, w1_ref, b1_ref, w2_ref, b2_ref, w3_ref, b3_ref, o_ref):
    # x_ref: (bt, D) tile in its native layout (no wrapper transpose).
    x_bt = x_ref[...].astype(jnp.bfloat16)

    # Layer 1: contract the shared D axis -> (H1, bt); batch lives on lanes.
    # bf16 MXU inputs, f32 accumulation.
    h1 = lax.dot_general(
        w1_ref[...], x_bt,
        dimension_numbers=(((1,), (1,)), ((), ())),
        preferred_element_type=jnp.float32,
    )
    h1 = jnp.maximum(h1 + b1_ref[...], 0.0)            # b1: (H1, 1) lane-broadcast

    # Layer 2: (H2, H1) @ (H1, bt) -> (H2, bt); bf16 MXU inputs, f32 accumulate.
    h2 = jnp.dot(w2_ref[...], h1.astype(jnp.bfloat16),
                 preferred_element_type=jnp.float32)
    h2 = jnp.maximum(h2 + b2_ref[...], 0.0)            # b2: (H2, 1)

    # Layer 3 (H2 -> 1): VPU multiply + cross-sublane (XLU) reduce; lane-dense
    # (1, bt) output row.  b3 is a scalar read from SMEM.
    out = jnp.sum(h2 * w3_ref[...], axis=0, keepdims=True) + b3_ref[0, 0]
    o_ref[...] = out.astype(o_ref.dtype)


def _round_up(n, m):
    return ((n + m - 1) // m) * m


def _choose_batch_tile(B, *, max_tile=2048, align=256):
    """Big enough to amortize the ~0.35us per-grid-step overhead, small enough
    that large batches split into >= 2 tiles (keeps both v7x TensorCores busy).
    Small batches use a single full-extent tile (no partial-block masking)."""
    if B <= align:
        return B
    return min(max_tile, _round_up(pl.cdiv(B, 2), align))


def brain_tissue_predictor(x, params, *, max_batch_tile=2048):
    """x: (B, input_dim) float32.  Returns (B, 1) float32."""
    w1, b1, w2, b2, w3, b3 = params
    B, D = x.shape
    H1 = w1.shape[0]   # 128
    H2 = w2.shape[0]   # 64

    bt = _choose_batch_tile(B, max_tile=max_batch_tile)
    num_tiles = pl.cdiv(B, bt)

    # bf16 weights for the MXU; accumulation stays f32 inside the kernel.
    w1_bf = w1.astype(jnp.bfloat16)
    w2_bf = w2.astype(jnp.bfloat16)

    in_specs = [
        pl.BlockSpec((bt, D), lambda i: (i, 0)),            # x, native (B, D) layout
        pl.BlockSpec((H1, D), lambda i: (0, 0)),             # w1 (constant block)
        pl.BlockSpec((H1, 1), lambda i: (0, 0)),             # b1
        pl.BlockSpec((H2, H1), lambda i: (0, 0)),            # w2
        pl.BlockSpec((H2, 1), lambda i: (0, 0)),             # b2
        pl.BlockSpec((H2, 1), lambda i: (0, 0)),             # w3 (as a column)
        pl.BlockSpec(memory_space=pltpu.MemorySpace.SMEM),   # b3 scalar in SMEM
    ]
    out_spec = pl.BlockSpec((1, bt), lambda i: (0, i))        # lane-dense output row

    flops = 2 * B * (D * H1 + H1 * H2 + H2)
    bytes_accessed = (
        x.size * 4                      # x read once, unpadded / untransposed
        + B * 4                         # output row
        + w1_bf.size * 2 + w2_bf.size * 2
        + (b1.size + b2.size + w3.size + b3.size) * 4
    )
    cost = pl.CostEstimate(
        flops=flops, transcendentals=0, bytes_accessed=bytes_accessed
    )

    # Footprint is tiny at the default tile sizes; only raise the scoped VMEM
    # limit (v5e default 16 MiB) if tiles are pushed very large.
    cp_kwargs = dict(dimension_semantics=("parallel",))
    if bt > 4096:
        cp_kwargs["vmem_limit_bytes"] = 48 * 1024 * 1024

    out_row = pl.pallas_call(
        mlp_kernel,
        out_shape=jax.ShapeDtypeStruct((1, B), jnp.float32),
        grid=(num_tiles,),
        in_specs=in_specs,
        out_specs=out_spec,
        compiler_params=pltpu.CompilerParams(**cp_kwargs),
        cost_estimate=cost,
    )(x, w1_bf, b1, w2_bf, b2, w3, b3)

    # Back to the PyTorch (B, 1) shape.
    return out_row[0].reshape(B, 1)


def init_params(key, input_dim):
    """nn.Linear-style init: weight (out, in), bias stored as an (out, 1) column,
    w3 stored as a (64, 1) column for the lane-dense layout."""
    k1, k2, k3, k4, k5, k6 = jax.random.split(key, 6)

    def linear(kw, kb, fan_in, fan_out):
        bound = 1.0 / jnp.sqrt(fan_in)
        w = jax.random.uniform(kw, (fan_out, fan_in), jnp.float32, -bound, bound)
        b = jax.random.uniform(kb, (fan_out, 1), jnp.float32, -bound, bound)
        return w, b

    w1, b1 = linear(k1, k2, input_dim, 128)   # (128, D), (128, 1)
    w2, b2 = linear(k3, k4, 128, 64)          # (64, 128), (64, 1)
    w3t, b3 = linear(k5, k6, 64, 1)           # (1, 64),  (1, 1)
    w3 = w3t.T                                # store as (64, 1) column
    return (w1, b1, w2, b2, w3, b3)


def reference(x, params, *, mxu_dtype=jnp.float32):
    """Pure-JAX reference.  mxu_dtype=bfloat16 reproduces the kernel's bf16 MXU
    inputs (f32 accumulation) for a tight numerical comparison."""
    w1, b1, w2, b2, w3, b3 = params
    c = lambda a: a.astype(mxu_dtype)
    h = jnp.maximum(
        jnp.dot(c(x), c(w1).T, preferred_element_type=jnp.float32) + b1[:, 0], 0.0)
    h = jnp.maximum(
        jnp.dot(c(h), c(w2).T, preferred_element_type=jnp.float32) + b2[:, 0], 0.0)
    return jnp.dot(h, w3, preferred_element_type=jnp.float32) + b3[0, 0]


if __name__ == "__main__":
    key = jax.random.PRNGKey(0)
    kx, kp = jax.random.split(key)

    batch, input_dim = 8, 32
    x = jax.random.normal(kx, (batch, input_dim), dtype=jnp.float32)
    params = init_params(kp, input_dim)

    out = jax.block_until_ready(brain_tissue_predictor(x, params))
    assert out.shape == (batch, 1), out.shape

    # Tight check against a reference that uses the same bf16 MXU inputs.
    ref_bf16 = reference(x, params, mxu_dtype=jnp.bfloat16)
    assert jnp.allclose(out, ref_bf16, atol=1e-3, rtol=1e-3), (
        float(jnp.max(jnp.abs(out - ref_bf16)))
    )
    # Loose sanity check against the full-f32 PyTorch-equivalent forward.
    ref_f32 = reference(x, params, mxu_dtype=jnp.float32)
    assert jnp.allclose(out, ref_f32, atol=5e-2, rtol=5e-2), (
        float(jnp.max(jnp.abs(out - ref_f32)))
    )
    print("KERNEL_OK")
</pallas_src>

<mosaic_0001>
module attributes {stable_mosaic.version = 11 : i64} {
  func.func @mlp_kernel(%arg0: i32, %arg1: memref<8x32xf32, #tpu.memory_space<vmem>>, %arg2: memref<128x32xbf16, #tpu.memory_space<vmem>>, %arg3: memref<128x1xf32, #tpu.memory_space<vmem>>, %arg4: memref<64x128xbf16, #tpu.memory_space<vmem>>, %arg5: memref<64x1xf32, #tpu.memory_space<vmem>>, %arg6: memref<64x1xf32, #tpu.memory_space<vmem>>, %arg7: memref<1x1xf32, #tpu.memory_space<smem>>, %arg8: memref<1x8xf32, #tpu.memory_space<vmem>>) attributes {dimension_semantics = [#tpu.dimension_semantics<parallel>], iteration_bounds = array<i64: 1>, scalar_prefetch = 0 : i64, scratch_operands = 0 : i64, tpu.core_type = #tpu.core_type<tc>, window_params = [{transform_indices = @transform_0, window_bounds = array<i64: 8, 32>}, {pipeline_mode = #tpu.pipeline_mode<synchronous>, transform_indices = @transform_1, window_bounds = array<i64: 128, 32>}, {pipeline_mode = #tpu.pipeline_mode<synchronous>, transform_indices = @transform_2, window_bounds = array<i64: 128, 1>}, {pipeline_mode = #tpu.pipeline_mode<synchronous>, transform_indices = @transform_3, window_bounds = array<i64: 64, 128>}, {pipeline_mode = #tpu.pipeline_mode<synchronous>, transform_indices = @transform_4, window_bounds = array<i64: 64, 1>}, {pipeline_mode = #tpu.pipeline_mode<synchronous>, transform_indices = @transform_5, window_bounds = array<i64: 64, 1>}, {transform_indices = @transform_6, window_bounds = array<i64: 1, 1>}, {transform_indices = @transform_7, window_bounds = array<i64: 1, 8>}]} {
    %c0 = arith.constant 0 : index
    %c0_0 = arith.constant 0 : index
    %0 = vector.load %arg1[%c0, %c0_0] : memref<8x32xf32, #tpu.memory_space<vmem>>, vector<8x32xf32>
    %1 = arith.truncf %0 : vector<8x32xf32> to vector<8x32xbf16>
    %c0_1 = arith.constant 0 : index
    %c0_2 = arith.constant 0 : index
    %2 = vector.load %arg2[%c0_1, %c0_2] : memref<128x32xbf16, #tpu.memory_space<vmem>>, vector<128x32xbf16>
    %cst = arith.constant dense<0.000000e+00> : vector<128x8xf32>
    %3 = tpu.matmul %2, %1, %cst {dimension_numbers = #tpu.dot_dimension_numbers<[1], [1], [0], [0], [0, 0, 1, 0], [], []>} : vector<128x32xbf16>, vector<8x32xbf16>, vector<128x8xf32> -> vector<128x8xf32>
    %c0_3 = arith.constant 0 : index
    %c0_4 = arith.constant 0 : index
    %4 = vector.load %arg3[%c0_3, %c0_4] : memref<128x1xf32, #tpu.memory_space<vmem>>, vector<128x1xf32>
    %5 = vector.broadcast %4 : vector<128x1xf32> to vector<128x8xf32>
    %6 = arith.addf %3, %5 : vector<128x8xf32>
    %cst_5 = arith.constant 0.000000e+00 : f32
    %7 = vector.broadcast %cst_5 : f32 to vector<128x8xf32>
    %8 = arith.maximumf %6, %7 : vector<128x8xf32>
    %c0_6 = arith.constant 0 : index
    %c0_7 = arith.constant 0 : index
    %9 = vector.load %arg4[%c0_6, %c0_7] : memref<64x128xbf16, #tpu.memory_space<vmem>>, vector<64x128xbf16>
    %10 = arith.truncf %8 : vector<128x8xf32> to vector<128x8xbf16>
    %cst_8 = arith.constant dense<0.000000e+00> : vector<64x8xf32>
    %11 = tpu.matmul %9, %10, %cst_8 {dimension_numbers = #tpu.dot_dimension_numbers<[1], [0], [0], [1], [0, 0, 1, 1], [], []>} : vector<64x128xbf16>, vector<128x8xbf16>, vector<64x8xf32> -> vector<64x8xf32>
    %c0_9 = arith.constant 0 : index
    %c0_10 = arith.constant 0 : index
    %12 = vector.load %arg5[%c0_9, %c0_10] : memref<64x1xf32, #tpu.memory_space<vmem>>, vector<64x1xf32>
    %13 = vector.broadcast %12 : vector<64x1xf32> to vector<64x8xf32>
    %14 = arith.addf %11, %13 : vector<64x8xf32>
    %cst_11 = arith.constant 0.000000e+00 : f32
    %15 = vector.broadcast %cst_11 : f32 to vector<64x8xf32>
    %16 = arith.maximumf %14, %15 : vector<64x8xf32>
    %c0_12 = arith.constant 0 : index
    %c0_13 = arith.constant 0 : index
    %17 = vector.load %arg6[%c0_12, %c0_13] : memref<64x1xf32, #tpu.memory_space<vmem>>, vector<64x1xf32>
    %18 = vector.broadcast %17 : vector<64x1xf32> to vector<64x8xf32>
    %19 = arith.mulf %16, %18 : vector<64x8xf32>
    %cst_14 = arith.constant dense<0.000000e+00> : vector<8xf32>
    %20 = vector.multi_reduction <add>, %19, %cst_14 [0] : vector<64x8xf32> to vector<8xf32>
    %21 = vector.shape_cast %20 : vector<8xf32> to vector<1x8xf32>
    %c0_15 = arith.constant 0 : index
    %c0_16 = arith.constant 0 : index
    %22 = memref.load %arg7[%c0_15, %c0_16] : memref<1x1xf32, #tpu.memory_space<smem>>
    %23 = vector.broadcast %22 : f32 to vector<1x8xf32>
    %24 = arith.addf %21, %23 : vector<1x8xf32>
    %c0_17 = arith.constant 0 : index
    %c0_18 = arith.constant 0 : index
    %25 = vector.load %arg8[%c0_17, %c0_18] : memref<1x8xf32, #tpu.memory_space<vmem>>, vector<1x8xf32>
    tpu.vector_store %arg8[%c0_17, %c0_18], %24 {strides = array<i32>} : memref<1x8xf32, #tpu.memory_space<vmem>>, vector<1x8xf32>,
    return
  }
  func.func @transform_0(%arg0: i32) -> (i32, i32) {
    %c0_i32 = arith.constant 0 : i32
    %c0_i32_0 = arith.constant 0 : i32
    return %arg0, %c0_i32 : i32, i32
  }
  func.func @transform_1(%arg0: i32) -> (i32, i32) {
    %c0_i32 = arith.constant 0 : i32
    %c0_i32_0 = arith.constant 0 : i32
    %c0_i32_1 = arith.constant 0 : i32
    return %c0_i32, %c0_i32_0 : i32, i32
  }
  func.func @transform_2(%arg0: i32) -> (i32, i32) {
    %c0_i32 = arith.constant 0 : i32
    %c0_i32_0 = arith.constant 0 : i32
    %c0_i32_1 = arith.constant 0 : i32
    return %c0_i32, %c0_i32_0 : i32, i32
  }
  func.func @transform_3(%arg0: i32) -> (i32, i32) {
    %c0_i32 = arith.constant 0 : i32
    %c0_i32_0 = arith.constant 0 : i32
    %c0_i32_1 = arith.constant 0 : i32
    return %c0_i32, %c0_i32_0 : i32, i32
  }
  func.func @transform_4(%arg0: i32) -> (i32, i32) {
    %c0_i32 = arith.constant 0 : i32
    %c0_i32_0 = arith.constant 0 : i32
    %c0_i32_1 = arith.constant 0 : i32
    return %c0_i32, %c0_i32_0 : i32, i32
  }
  func.func @transform_5(%arg0: i32) -> (i32, i32) {
    %c0_i32 = arith.constant 0 : i32
    %c0_i32_0 = arith.constant 0 : i32
    %c0_i32_1 = arith.constant 0 : i32
    return %c0_i32, %c0_i32_0 : i32, i32
  }
  func.func @transform_6(%arg0: i32) -> (i32, i32) {
    %c0_i32 = arith.constant 0 : i32
    %c0_i32_0 = arith.constant 0 : i32
    %c0_i32_1 = arith.constant 0 : i32
    return %c0_i32, %c0_i32_0 : i32, i32
  }
  func.func @transform_7(%arg0: i32) -> (i32, i32) {
    %c0_i32 = arith.constant 0 : i32
    %c0_i32_0 = arith.constant 0 : i32
    return %c0_i32, %arg0 : i32, i32
  }
}

</mosaic_0001>

<bundles_post_ra>
// kernel: tpu_custom_call.1
= control target key start
LH: loop header
LB: loop body
LE: loop exit
PB: predicated region body
PF: predicated region fallthrough
CT: control target
= control target key end

     0   :  { %vm183_vm0 = vcmask 261120   ;;  %v608_v3 = vmov 0   ;;  %s814_s0 = inlined_call_operand.vmem [shape: f32[8,32], index: 0, kind: input, shape index: {}]   ;;  %s815_s1 = inlined_call_operand.vmem [shape: bf16[128,32], index: 1, kind: input, shape index: {}]   ;;  %s816_s2 = inlined_call_operand.vmem [shape: f32[128,1], index: 2, kind: input, shape index: {}]   ;;  %s817_s3 = inlined_call_operand.vmem [shape: bf16[64,128], index: 3, kind: input, shape index: {}]   ;;  %s818_s4 = inlined_call_operand.vmem [shape: f32[64,1], index: 4, kind: input, shape index: {}]   ;;  %s819_s5 = inlined_call_operand.vmem [shape: f32[64,1], index: 5, kind: input, shape index: {}]   ;;  %s820_s6 = inlined_call_operand.<no memory space> [shape: f32[1,1], index: 6, kind: input, shape index: {}]   ;;  %s821_s7 = inlined_call_operand.hbm [shape: f32[1,8], index: 7, kind: output, shape index: {}]  }
   0x1   :  { %v61_v0 = vld [vmem:[%s816_s2 + $0x70] sm:$0xff]  ;;  %v59_v1 = vld [vmem:[%s816_s2 + $0x60] sm:$0xff]  ;;  %580 = vset.pattern.permute.xlu1 %v608_v3  ;;  %579 = vset.pattern.permute.xlu0 %v608_v3  ;;  %v62_v7 = vld [vmem:[%s816_s2 + $0x78] sm:$0xff] }
   0x2   :  { %v29_v2 = vld [vmem:[%s814_s0] sm:$0xff]  ;;  %135 = vperm.xlu0 %579, %v61_v0   ;;  %125 = vperm.xlu1 %580, %v59_v1   ;;  %v57_v6 = vld [vmem:[%s816_s2 + $0x50] sm:$0xff] }
   0x3   :  { %v30_v4 = vpack.c.bf16 %v29_v2, %v29_v2  ;;  %581 = vset.pattern.permute.xlu2 %v608_v3 }
   0x4   :  { %115 = vperm.xlu2 %581, %v57_v6  }
   0x5   :  { %v209_v5 = vsel %vm183_vm0, %v30_v4, 0 }
   0x6   :  { %218 = vmatpush.bf16.xpose.msra.mxu0 %v209_v5  ;;  %568 = vmatpush.bf16.xpose.msra.mxu2 %v209_v5 }
   0x7   :  { %13 = vsyncpa [#allocation4], 0  ;;  %v60_v8 = vld [vmem:[%s816_s2 + $0x68] sm:$0xff]  ;;  %v556_v9 = vld [vmem:[%s815_s1] sm:$0xff]  ;;  %vm457_vm1 = vcmask 64512   ;;  %s609_s14 = smov [#allocation3]  }
   0x8   :  { %v560_v10 = vld [vmem:[%s815_s1 + $0x20] sm:$0xff]  ;;  %v58_v11 = vld [vmem:[%s816_s2 + $0x58] sm:$0xff]  ;;  %v56_v12 = vld [vmem:[%s816_s2 + $0x48] sm:$0xff]  ;;  %s489_s15 = sshll.u32 %s609_s14, 4  ;;  %s491_s18 = sshll.u32 %s821_s7, 4  ;;  %vm482_vm2 = vcmask 57344   ;;  %s490_s15 = int_to_ptr.vmem [resolvable:$true] %s489_s15  ;;  %s492_s18 = int_to_ptr.hbm [resolvable:$true] %s491_s18 }
   0x9   :  { %v55_v13 = vld [vmem:[%s816_s2 + $0x40] sm:$0xff]  ;;  %v53_v14 = vld [vmem:[%s816_s2 + $0x30] sm:$0xff]  ;;  %v54_v15 = vld [vmem:[%s816_s2 + $0x38] sm:$0xff] }
   0xa   :  { %140 = vperm.xlu0 %579, %v62_v7   ;;  %130 = vperm.xlu1 %580, %v60_v8   ;;  %v51_v16 = vld [vmem:[%s816_s2 + $0x20] sm:$0xff]  ;;  %v557_v17 = vld [vmem:[%s815_s1 + $0x8] sm:$0xff]  ;;  %v50_v20 = vld [vmem:[%s816_s2 + $0x18] sm:$0xff] }
   0xb   :  { %v561_v18 = vld [vmem:[%s815_s1 + $0x28] sm:$0xff]  ;;  %v49_v21 = vld [vmem:[%s816_s2 + $0x10] sm:$0xff]  ;;  %v47_v22 = vld [vmem:[%s816_s2] sm:$0xff] }
   0xc   :  { %120 = vperm.xlu2 %581, %v58_v11   ;;  %v52_v19 = vld [vmem:[%s816_s2 + $0x28] sm:$0xff]  ;;  %v292_v23 = vld [vmem:[%s818_s4] sm:$0xff]  ;;  %v558_v25 = vld [vmem:[%s815_s1 + $0x10] sm:$0xff] }
   0xd   :  { %532 = vmatmul.msk.bf16.vlgmr.msra.gmra.mxu0 %vm183_vm0, %v556_v9  ;;  %536 = vmatmul.msk.bf16.vlgmr.msra.gmra.mxu2 %vm183_vm0, %v560_v10  ;;  %v48_v24 = vld [vmem:[%s816_s2 + $0x8] sm:$0xff]  ;;  %v562_v26 = vld [vmem:[%s815_s1 + $0x30] sm:$0xff]  ;;  %v295_v28 = vld [vmem:[%s818_s4 + $0x18] sm:$0xff] }
   0xe   :  { %v293_v27 = vld [vmem:[%s818_s4 + $0x8] sm:$0xff]  ;;  %v294_v29 = vld [vmem:[%s818_s4 + $0x10] sm:$0xff]  ;;  %v296_v30 = vld [vmem:[%s818_s4 + $0x20] sm:$0xff] }
   0xf   :  { %v402_v31 = vld [vmem:[%s819_s5 + $0x8] sm:$0xff]  ;;  %v401_v32 = vld [vmem:[%s819_s5] sm:$0xff]  ;;  %v559_v33 = vld [vmem:[%s815_s1 + $0x18] sm:$0xff] }
  0x10   :  { %v563_v34 = vld [vmem:[%s815_s1 + $0x38] sm:$0xff]  ;;  %v403_v35 = vld [vmem:[%s819_s5 + $0x10] sm:$0xff]  ;;  %v297_v37 = vld [vmem:[%s818_s4 + $0x28] sm:$0xff] }
  0x11   :  { %v404_v36 = vld [vmem:[%s819_s5 + $0x18] sm:$0xff]  ;;  %v298_v38 = vld [vmem:[%s818_s4 + $0x30] sm:$0xff]  ;;  %v405_v40 = vld [vmem:[%s819_s5 + $0x20] sm:$0xff] }
  0x12   :  { %110 = vperm.xlu1 %580, %v56_v12   ;;  %105 = vperm.xlu0 %579, %v55_v13   ;;  %v299_v39 = vld [vmem:[%s818_s4 + $0x38] sm:$0xff]  ;;  %v406_v41 = vld [vmem:[%s819_s5 + $0x28] sm:$0xff]  ;;  %v407_v43 = vld [vmem:[%s819_s5 + $0x30] sm:$0xff] }
  0x13   :  { %v408_v42 = vld [vmem:[%s819_s5 + $0x38] sm:$0xff] }
  0x14   :  { %95 = vperm.xlu2 %581, %v53_v14  }
  0x1a   :  { %100 = vperm.xlu0 %579, %v54_v15   ;;  %85 = vperm.xlu1 %580, %v51_v16  }
  0x1c   :  { %90 = vperm.xlu2 %581, %v52_v19  }
  0x1d   :  { %533 = vmatmul.msk.bf16.gmra.mxu0 %vm183_vm0, %v557_v17  ;;  %537 = vmatmul.msk.bf16.gmra.mxu2 %vm183_vm0, %v561_v18 }
  0x22   :  { %80 = vperm.xlu1 %580, %v50_v20   ;;  %75 = vperm.xlu0 %579, %v49_v21  }
  0x24   :  { %65 = vperm.xlu2 %581, %v47_v22  }
  0x2a   :  { %302 = vperm.xlu1 %580, %v292_v23   ;;  %70 = vperm.xlu0 %579, %v48_v24  }
  0x2c   :  { %307 = vperm.xlu2 %581, %v293_v27  }
  0x2d   :  { %534 = vmatmul.msk.bf16.gmra.mxu0 %vm183_vm0, %v558_v25  ;;  %538 = vmatmul.msk.bf16.gmra.mxu2 %vm183_vm0, %v562_v26 }
  0x32   :  { %317 = vperm.xlu1 %580, %v295_v28   ;;  %312 = vperm.xlu0 %579, %v294_v29  }
  0x34   :  { %322 = vperm.xlu2 %581, %v296_v30  }
  0x3a   :  { %416 = vperm.xlu1 %580, %v402_v31   ;;  %411 = vperm.xlu0 %579, %v401_v32  }
  0x3c   :  { %421 = vperm.xlu2 %581, %v403_v35  }
  0x3d   :  { %535 = vmatmul.msk.bf16.gmra.mxu0 %vm183_vm0, %v559_v33  ;;  %539 = vmatmul.msk.bf16.gmra.mxu2 %vm183_vm0, %v563_v34 }
  0x42   :  { %426 = vperm.xlu1 %580, %v404_v36   ;;  %327 = vperm.xlu0 %579, %v297_v37  }
  0x44   :  { %332 = vperm.xlu2 %581, %v298_v38  }
  0x4a   :  { %337 = vperm.xlu1 %580, %v299_v39   ;;  %431 = vperm.xlu0 %579, %v405_v40  }
  0x4c   :  { %436 = vperm.xlu2 %581, %v406_v41  }
  0x52   :  { %446 = vperm.xlu1 %580, %v408_v42   ;;  %441 = vperm.xlu0 %579, %v407_v43  }
  0x5e   :  { %v116_v56 = vpop.permute.xlu2 %115 }
  0x66   :  { %v121_v62 = vpop.permute.xlu2 %120 }
  0x6e   :  { %v96_v6 = vpop.permute.xlu2 %95 }
  0x74   :  { %v136_v52 = vpop.permute.xlu0 %135  ;;  %v126_v54 = vpop.permute.xlu1 %125 }
  0x76   :  { %v91_v24 = vpop.permute.xlu2 %90 }
  0x7c   :  { %v141_v57 = vpop.permute.xlu0 %140  ;;  %v131_v59 = vpop.permute.xlu1 %130 }
  0x7e   :  { %v66_v41 = vpop.permute.xlu2 %65 }
  0x84   :  { %v106_v63 = vpop.permute.xlu0 %105  ;;  %v111_v0 = vpop.permute.xlu1 %110 }
  0x8a   :  { %v782_v44 = vpop.f32.mrf.mxu0 }
  0x8b   :  { %v221_v42 = vadd.f32 %v782_v44, %v66_v41  ;;  %v565_v44 = vld [vmem:[%s817_s3 + $0x8] sm:$0xff] }
  0x8c   :  { %v101_v10 = vpop.permute.xlu0 %100  ;;  %v86_v19 = vpop.permute.xlu1 %85 }
  0x90   :  { %v240_v45 = vpop.f32.mrf.mxu2 }
  0x91   :  { %v241_v20 = vadd.f32 %v240_v45, %v106_v63 }
  0x92   :  { %v784_v46 = vpop.f32.mrf.mxu0 }
  0x93   :  { %v268_v28 = vmax.f32 %v241_v20, 0.0 }
  0x94   :  { %v76_v29 = vpop.permute.xlu0 %75  ;;  %v81_v35 = vpop.permute.xlu1 %80 }
  0x98   :  { %v242_v47 = vpop.f32.mrf.mxu2 }
  0x99   :  { %v243_v16 = vadd.f32 %v242_v47, %v111_v0 }
  0x9a   :  { %v225_v48 = vpop.f32.mrf.mxu0 }
  0x9b   :  { %v269_v23 = vmax.f32 %v243_v16, 0.0  ;;  %v226_v36 = vadd.f32 %v225_v48, %v76_v29 }
  0x9c   :  { %v71_v43 = vpop.permute.xlu0 %70 }
  0x9d   :  { %v288_v30 = vpack.c.bf16 %v269_v23, %v268_v28  ;;  %v262_v45 = vmax.f32 %v226_v36, 0.0  ;;  %v223_v47 = vadd.f32 %v784_v46, %v71_v43  ;;  %v566_v46 = vld [vmem:[%s817_s3 + $0x10] sm:$0xff] }
  0xa0   :  { %v245_v49 = vpop.f32.mrf.mxu2 }
  0xa1   :  { %v246_v14 = vadd.f32 %v245_v49, %v116_v56  ;;  %v303_v56 = vpop.permute.xlu1 %302 }
  0xa2   :  { %v227_v51 = vpop.f32.mrf.mxu0 }
  0xa3   :  { %v270_v22 = vmax.f32 %v246_v14, 0.0  ;;  %v228_v37 = vadd.f32 %v227_v51, %v81_v35 }
  0xa5   :  { %v263_v49 = vmax.f32 %v228_v37, 0.0 }
  0xa7   :  { %v285_v48 = vpack.c.bf16 %v263_v49, %v262_v45 }
  0xa8   :  { %v247_v50 = vpop.f32.mrf.mxu2 }
  0xa9   :  { %v248_v11 = vadd.f32 %v247_v50, %v121_v62 }
  0xaa   :  { %v230_v55 = vpop.f32.mrf.mxu0 }
  0xab   :  { %v271_v17 = vmax.f32 %v248_v11, 0.0  ;;  %v231_v31 = vadd.f32 %v230_v55, %v86_v19  ;;  %v567_v55 = vld [vmem:[%s817_s3 + $0x18] sm:$0xff] }
  0xad   :  { %v289_v27 = vpack.c.bf16 %v271_v17, %v270_v22  ;;  %v264_v38 = vmax.f32 %v231_v31, 0.0 }
  0xb0   :  { %v250_v53 = vpop.f32.mrf.mxu2 }
  0xb1   :  { %v251_v7 = vadd.f32 %v250_v53, %v126_v54  ;;  %v261_v53 = vmax.f32 %v223_v47, 0.0  ;;  %v564_v54 = vld [vmem:[%s817_s3] sm:$0xff] }
  0xb2   :  { %v232_v60 = vpop.f32.mrf.mxu0 }
  0xb3   :  { %v272_v15 = vmax.f32 %v251_v7, 0.0  ;;  %v233_v32 = vadd.f32 %v232_v60, %v91_v24  ;;  %v318_v60 = vpop.permute.xlu1 %317 }
  0xb5   :  { %v265_v39 = vmax.f32 %v233_v32, 0.0 }
  0xb7   :  { %v286_v50 = vpack.c.bf16 %v265_v39, %v264_v38 }
  0xb8   :  { %v252_v58 = vpop.f32.mrf.mxu2 }
  0xb9   :  { %v253_v4 = vadd.f32 %v252_v58, %v131_v59  ;;  %v313_v58 = vpop.permute.xlu0 %312 }
  0xba   :  { %v235_v2 = vpop.f32.mrf.mxu0 }
  0xbb   :  { %v273_v12 = vmax.f32 %v253_v4, 0.0  ;;  %v236_v25 = vadd.f32 %v235_v2, %v96_v6 }
  0xbd   :  { %v290_v18 = vpack.c.bf16 %v273_v12, %v272_v15  ;;  %v266_v33 = vmax.f32 %v236_v25, 0.0 }
  0xc0   :  { %v255_v61 = vpop.f32.mrf.mxu2 }
  0xc1   :  { %v256_v1 = vadd.f32 %v255_v61, %v136_v52  ;;  %v260_v52 = vmax.f32 %v221_v42, 0.0  ;;  %v412_v63 = vpop.permute.xlu0 %411 }
  0xc2   :  { %v237_v21 = vpop.f32.mrf.mxu0 }
  0xc3   :  { %v274_v8 = vmax.f32 %v256_v1, 0.0  ;;  %v238_v26 = vadd.f32 %v237_v21, %v101_v10  ;;  %v284_v51 = vpack.c.bf16 %v261_v53, %v260_v52  ;;  %v417_v1 = vpop.permute.xlu1 %416 }
  0xc5   :  { %v267_v34 = vmax.f32 %v238_v26, 0.0 }
  0xc7   :  { %v287_v40 = vpack.c.bf16 %v267_v34, %v266_v33 }
  0xc8   :  { %v257_v3 = vpop.f32.mrf.mxu2 }
  0xc9   :  { %v258_v5 = vadd.f32 %v257_v3, %v141_v57  ;;  %v308_v57 = vpop.permute.xlu2 %307 }
  0xcb   :  { %v275_v9 = vmax.f32 %v258_v5, 0.0  ;;  %v328_v5 = vpop.permute.xlu0 %327 }
  0xcd   :  { %v291_v13 = vpack.c.bf16 %v275_v9, %v274_v8  ;;  %v427_v9 = vpop.permute.xlu1 %426 }
  0xcf   :  { %364 = vmatpush.bf16.msra.mxu1 %v291_v13  ;;  %569 = vmatpush.bf16.msra.mxu3 %v291_v13 }
  0xd1   :  { %v323_v61 = vpop.permute.xlu2 %322 }
  0xd3   :  { %365 = vmatpush.bf16.msra.mxu1 %v290_v18  ;;  %570 = vmatpush.bf16.msra.mxu3 %v290_v18  ;;  %v432_v17 = vpop.permute.xlu0 %431 }
  0xd7   :  { %366 = vmatpush.bf16.msra.mxu1 %v289_v27  ;;  %571 = vmatpush.bf16.msra.mxu3 %v289_v27 }
  0xd9   :  { %v422_v2 = vpop.permute.xlu2 %421 }
  0xdb   :  { %367 = vmatpush.bf16.msra.mxu1 %v288_v30  ;;  %572 = vmatpush.bf16.msra.mxu3 %v288_v30  ;;  %v338_v30 = vpop.permute.xlu1 %337  ;;  %v442_v38 = vpop.permute.xlu0 %441 }
  0xdf   :  { %368 = vmatpush.bf16.msra.mxu1 %v287_v40  ;;  %573 = vmatpush.bf16.msra.mxu3 %v287_v40 }
  0xe1   :  { %v333_v14 = vpop.permute.xlu2 %332 }
  0xe3   :  { %369 = vmatpush.bf16.msra.mxu1 %v286_v50  ;;  %574 = vmatpush.bf16.msra.mxu3 %v286_v50  ;;  %v447_v53 = vpop.permute.xlu1 %446 }
  0xe7   :  { %370 = vmatpush.bf16.msra.mxu1 %v285_v48  ;;  %575 = vmatpush.bf16.msra.mxu3 %v285_v48 }
  0xe9   :  { %v437_v34 = vpop.permute.xlu2 %436 }
  0xeb   :  { %371 = vmatpush.bf16.msra.mxu1 %v284_v51  ;;  %576 = vmatpush.bf16.msra.mxu3 %v284_v51 }
  0xee   :  { %372 = vmatmul.bf16.vlgmr.msra.gmra.mxu1 %v564_v54  ;;  %377 = vmatmul.bf16.vlgmr.msra.gmra.mxu3 %v565_v44 }
  0xfe   :  { %382 = vmatmul.bf16.gmra.mxu3 %v566_v46 }
 0x10e   :  { %387 = vmatmul.bf16.gmra.mxu3 %v567_v55 }
 0x16b   :  { %v373_v62 = vpop.f32.mrf.mxu1 }
 0x16c   :  { %v374_v7 = vadd.f32 %v373_v62, %v303_v56 }
 0x16e   :  { %v393_v10 = vmax.f32 %v374_v7, 0.0 }
 0x170   :  { %v449_v18 = vmul.f32 %v412_v63, %v393_v10 }
 0x171   :  { %v378_v59 = vpop.f32.mrf.mxu3 }
 0x172   :  { %v379_v12 = vadd.f32 %v378_v59, %v313_v58  ;;  %v458_v24 = vsel %vm457_vm1, %v449_v18, 0.0 }
 0x173   :  { %v375_v3 = vpop.f32.mrf.mxu1 }
 0x174   :  { %v376_v6 = vadd.f32 %v375_v3, %v308_v57  ;;  %v395_v19 = vmax.f32 %v379_v12, 0.0 }
 0x176   :  { %v394_v8 = vmax.f32 %v376_v6, 0.0  ;;  %v451_v26 = vmul.f32 %v422_v2, %v395_v19 }
 0x178   :  { %v450_v15 = vmul.f32 %v417_v1, %v394_v8  ;;  %v461_v35 = vsel %vm457_vm1, %v451_v26, 0.0 }
 0x179   :  { %v380_v0 = vpop.f32.mrf.mxu3 }
 0x17a   :  { %v381_v13 = vadd.f32 %v380_v0, %v318_v60  ;;  %v459_v22 = vsel %vm457_vm1, %v450_v15, 0.0  ;;  %v480_v60 = vstv %s820_s6 }
 0x17b   :  { %v460_v31 = vadd.f32 %v459_v22, %v458_v24 }
 0x17c   :  { %v396_v20 = vmax.f32 %v381_v13, 0.0 }
 0x17d   :  { %v462_v39 = vadd.f32 %v461_v35, %v460_v31 }
 0x17e   :  { %v452_v27 = vmul.f32 %v427_v9, %v396_v20 }
 0x180   :  { %v463_v36 = vsel %vm457_vm1, %v452_v27, 0.0 }
 0x181   :  { %v383_v4 = vpop.f32.mrf.mxu3  ;;  %v464_v42 = vadd.f32 %v463_v36, %v462_v39 }
 0x182   :  { %v384_v16 = vadd.f32 %v383_v4, %v323_v61 }
 0x184   :  { %v397_v23 = vmax.f32 %v384_v16, 0.0 }
 0x186   :  { %v453_v32 = vmul.f32 %v432_v17, %v397_v23 }
 0x188   :  { %v465_v40 = vsel %vm457_vm1, %v453_v32, 0.0 }
 0x189   :  { %v385_v11 = vpop.f32.mrf.mxu3  ;;  %v466_v49 = vadd.f32 %v465_v40, %v464_v42 }
 0x18a   :  { %v386_v21 = vadd.f32 %v385_v11, %v328_v5 }
 0x18c   :  { %v398_v28 = vmax.f32 %v386_v21, 0.0 }
 0x18e   :  { %v454_v37 = vmul.f32 %v437_v34, %v398_v28 }
 0x190   :  { %v467_v45 = vsel %vm457_vm1, %v454_v37, 0.0 }
 0x191   :  { %v388_v25 = vpop.f32.mrf.mxu3  ;;  %v468_v48 = vadd.f32 %v467_v45, %v466_v49 }
 0x192   :  { %v389_v29 = vadd.f32 %v388_v25, %v333_v14 }
 0x194   :  { %v399_v33 = vmax.f32 %v389_v29, 0.0 }
 0x196   :  { %v455_v41 = vmul.f32 %v442_v38, %v399_v33 }
 0x198   :  { %v469_v50 = vsel %vm457_vm1, %v455_v41, 0.0 }
 0x199   :  { %v390_v43 = vpop.f32.mrf.mxu3  ;;  %v470_v54 = vadd.f32 %v469_v50, %v468_v48 }
 0x19a   :  { %v391_v47 = vadd.f32 %v390_v43, %v338_v30 }
 0x19c   :  { %v400_v52 = vmax.f32 %v391_v47, 0.0 }
 0x19e   :  { %v456_v51 = vmul.f32 %v447_v53, %v400_v52 }
 0x1a0   :  { %v471_v44 = vsel %vm457_vm1, %v456_v51, 0.0 }
 0x1a1   :  { %v472_v46 = vadd.f32 %v471_v44, %v470_v54 }
 0x1a3   :  { %v473_v55 = vrot.slane %v472_v46, 4 }
 0x1a5   :  { %v474_v56 = vadd.f32 %v473_v55, %v472_v46 }
 0x1a7   :  { %v475_v57 = vrot.slane %v474_v56, 2 }
 0x1a9   :  { %v476_v58 = vadd.f32 %v475_v57, %v474_v56 }
 0x1ab   :  { %v477_v59 = vrot.slane %v476_v58, 1 }
 0x1ad   :  { %v478_v61 = vadd.f32 %v477_v59, %v476_v58 }
 0x1af   :  { %v481_v62 = vadd.f32 %v480_v60, %v478_v61 }
 0x1b1   :  { %483 = vst.msk [vmem:[#allocation3] sm:$0x1] %vm482_vm2, %v481_v62 }
 0x1b2   :  { %494 = dma.vmem_to_hbm [thread:$0]  %s490_s15, 16, %s492_s18, [#allocation4]  }
 0x1b3   :  { %606 = dma.done.wait [#allocation4], 16  }
 0x1b4   :  { %607 = vsyncadd [#allocation4], 4294967280 }
 0x1b5   :  { %499 = vsyncpa [#allocation4], 1 }

</bundles_post_ra>
